<compile_context>
chip_gen: v7x
topology: tpu7x:2x2x1
jax: 0.10.0
libtpu: 0.0.40
codegen_flags: <defaults>
</compile_context>

<pallas_src>
import functools

import jax
import jax.numpy as jnp
from jax import lax
from jax.experimental import pallas as pl
from jax.experimental.pallas import tpu as pltpu

EPS = 1e-5
NEG_SLOPE = 0.2


def _make_kernel(p_true, p_tile, num_p_tiles, needs_mask):
    """Builds the kernel body with static tiling constants baked in."""

    def kernel(patches_ref, weight_ref, gamma_ref, beta_ref, out_ref,
               sum_ref, sumsq_ref):
        # patches_ref: (1, CK, p_tile)    weight_ref: (C_out, CK)
        # gamma_ref/beta_ref: (C_out, 1)  out_ref: (1, C_out, p_pad), resident over j
        # sum_ref/sumsq_ref: (C_out, 1) f32 VMEM scratch
        j = pl.program_id(1)

        @pl.when(j == 0)
        def _init():
            sum_ref[...] = jnp.zeros_like(sum_ref)
            sumsq_ref[...] = jnp.zeros_like(sumsq_ref)

        # Conv tile as a matmul on the MXU (bf16/f32 operands, f32 accumulation).
        y = jnp.dot(weight_ref[...], patches_ref[0],
                    preferred_element_type=jnp.float32)          # (C_out, p_tile)

        if needs_mask:
            # The last P tile overhangs the (un-padded) patch array; zero the
            # invalid lanes so stats and the staged block are unaffected.
            lane = lax.broadcasted_iota(jnp.int32, y.shape, 1)
            y = jnp.where(j * p_tile + lane < p_true, y, 0.0)

        # Single-pass instance-norm statistics (lane-axis reduce on the XLU).
        # NOTE: E[x^2]-E[x]^2 in f32; adequate for conv-scale activations
        # (clamped at 0), switch to two-pass if |mean| >> std ever matters.
        sum_ref[...] += jnp.sum(y, axis=1, keepdims=True)
        sumsq_ref[...] += jnp.sum(y * y, axis=1, keepdims=True)

        # Stage the conv result into the resident (lane-dense) output block.
        if num_p_tiles == 1:
            out_ref[0] = y.astype(out_ref.dtype)
        else:
            start = pl.multiple_of(j * p_tile, 128)
            out_ref[0, :, pl.ds(start, p_tile)] = y.astype(out_ref.dtype)

        @pl.when(j == num_p_tiles - 1)
        def _finalize():
            inv_p = 1.0 / float(p_true)     # divide by TRUE P (masked cols are 0)
            mean = sum_ref[...] * inv_p                                   # (C_out, 1)
            var = jnp.maximum(sumsq_ref[...] * inv_p - mean * mean, 0.0)  # biased var
            scale = gamma_ref[...] * lax.rsqrt(var + EPS)
            shift = beta_ref[...] - mean * scale
            z = out_ref[0].astype(jnp.float32) * scale + shift            # (C_out, p_pad)
            out_ref[0] = jnp.where(z >= 0, z, NEG_SLOPE * z).astype(out_ref.dtype)

    return kernel


def _im2col_ckp(x, k, stride):
    """x: [N, C, H, W] -> patches [N, C*k*k, Ho*Wo] (order c, kh, kw).

    Runs in x.dtype: the caller casts to the compute dtype FIRST so the
    duplicated patch buffer is narrow end-to-end (no f32 intermediate).
    """
    n, c, h, w = x.shape
    ho = (h - k) // stride + 1
    wo = (w - k) // stride + 1
    cols = []
    for kh in range(k):
        for kw in range(k):
            cols.append(x[:, :, kh:kh + stride * ho:stride, kw:kw + stride * wo:stride])
    p = jnp.stack(cols, axis=2)                    # [N, C, k*k, Ho, Wo]
    return p.reshape(n, c * k * k, ho * wo), ho, wo


def _round_up(a, b):
    return (a + b - 1) // b * b


def _vmem_budget_bytes():
    """Generation-aware usable-VMEM budget (leaves headroom for the compiler)."""
    cap = None
    try:
        cap = int(pltpu.get_tpu_info().vmem_capacity_bytes)
    except Exception:
        cap = None
    if cap is None:
        try:
            kind = jax.devices()[0].device_kind.lower()
        except Exception:
            kind = ""
        cap = (64 << 20) if "v7" in kind else (128 << 20)
    return (cap * 4) // 5          # ~100 MiB on v5e/v6e, ~51 MiB on v7x


@functools.partial(
    jax.jit,
    static_argnames=("stride", "kernel_size", "compute_dtype", "out_dtype",
                     "p_tile_max"))
def cnn_block_forward(x, weight, gamma, beta, *, stride=2, kernel_size=4,
                      compute_dtype=jnp.bfloat16, out_dtype=jnp.float32,
                      p_tile_max=1024):
    """x: [N, C_in, H, W]; weight: [C_out, C_in, K, K]; returns NCHW out_dtype."""
    n, c_in, h, w = x.shape
    c_out = weight.shape[0]
    k = kernel_size
    ck = c_in * k * k

    # Cast BEFORE im2col so the patch buffer is narrow end-to-end.
    # TODO(synk): build the (CK, p_tile) operand fully in-kernel (manual DMA of
    # row slabs of x + in-VMEM shifted/strided views) to drop the im2col HBM
    # buffer entirely.
    x = x.astype(compute_dtype)
    patches, ho, wo = _im2col_ckp(x, k, stride)     # [N, CK, P], compute_dtype
    p_dim = ho * wo

    in_isz = jnp.dtype(compute_dtype).itemsize
    out_isz = jnp.dtype(out_dtype).itemsize
    budget = _vmem_budget_bytes()

    # Lane tiling of P (multiples of 128). No padding copy of the patch buffer:
    # the last tile may overhang the array; the kernel masks invalid lanes.
    p_tile = max(128, (min(p_tile_max, _round_up(p_dim, 128)) // 128) * 128)
    while p_tile > 128 and 2 * ck * p_tile * in_isz > budget // 4:
        p_tile -= 128                               # cap streamed double-buffer
    num_p_tiles = pl.cdiv(p_dim, p_tile)
    p_pad = num_p_tiles * p_tile
    needs_mask = (p_pad != p_dim)

    w2 = weight.reshape(c_out, ck).astype(compute_dtype)          # [C_out, CK]
    g2 = gamma.reshape(c_out, 1).astype(jnp.float32)
    b2 = beta.reshape(c_out, 1).astype(jnp.float32)

    # VMEM estimate: double-buffered patch tiles + one resident weight copy
    # (constant index_map, never re-DMAed) + resident output block (x2 across
    # the batch axis) + tiny scratch.  Generation-aware clamp.
    est = (2 * ck * p_tile * in_isz
           + c_out * ck * in_isz
           + 2 * c_out * 4                          # gamma/beta
           + 2 * c_out * p_pad * out_isz            # resident output block
           + 2 * c_out * 4)                         # sum/sumsq scratch
    vmem_limit = int(min(max(est + (8 << 20), 32 << 20), budget))
    # TODO(synk): if the resident output term alone exceeds ~budget/2 (deep v7x
    # layers with huge P), switch to a two-sweep grid (stats sweep + p_tile-wide
    # normalize sweep) instead of holding the whole per-sample block resident.
    # TODO(synk): batch-1 v7x core-parallel path (split P across the two
    # TensorCores with partial-stat combine); no-op on v5e/v6e.

    kernel = _make_kernel(p_dim, p_tile, num_p_tiles, needs_mask)

    out = pl.pallas_call(
        kernel,
        out_shape=jax.ShapeDtypeStruct((n, c_out, p_dim), out_dtype),
        grid_spec=pltpu.PrefetchScalarGridSpec(
            num_scalar_prefetch=0,
            grid=(n, num_p_tiles),
            in_specs=[
                pl.BlockSpec((1, ck, p_tile), lambda i, j: (i, 0, j)),
                pl.BlockSpec((c_out, ck), lambda i, j: (0, 0)),
                pl.BlockSpec((c_out, 1), lambda i, j: (0, 0)),
                pl.BlockSpec((c_out, 1), lambda i, j: (0, 0)),
            ],
            out_specs=pl.BlockSpec((1, c_out, p_pad), lambda i, j: (i, 0, 0)),
            scratch_shapes=[pltpu.VMEM((c_out, 1), jnp.float32),
                            pltpu.VMEM((c_out, 1), jnp.float32)],
        ),
        compiler_params=pltpu.CompilerParams(
            dimension_semantics=("parallel", "arbitrary"),
            vmem_limit_bytes=vmem_limit),
    )(patches, w2, g2, b2)

    # [N, C_out, P] -> NCHW: contiguous reshape (no trim slice, no HBM copy).
    return out.reshape(n, c_out, ho, wo)


def _reference_forward(x, weight, gamma, beta, *, stride=2):
    """Pure-JAX reference (NCHW conv + instance norm + leaky relu)."""
    y = lax.conv_general_dilated(
        x.astype(jnp.float32), weight.astype(jnp.float32),
        window_strides=(stride, stride), padding="VALID",
        dimension_numbers=("NCHW", "OIHW", "NCHW"))
    mean = jnp.mean(y, axis=(2, 3), keepdims=True)
    var = jnp.mean((y - mean) ** 2, axis=(2, 3), keepdims=True)
    y = (y - mean) / jnp.sqrt(var + EPS)
    y = y * gamma.reshape(1, -1, 1, 1) + beta.reshape(1, -1, 1, 1)
    return jnp.where(y >= 0, y, NEG_SLOPE * y)


if __name__ == "__main__":
    key = jax.random.PRNGKey(0)
    kx, kw, kg, kb, kx2 = jax.random.split(key, 5)

    N, C_IN, H, W = 2, 4, 16, 16
    C_OUT, K, STRIDE = 8, 4, 2

    x = jax.random.normal(kx, (N, C_IN, H, W), dtype=jnp.float32)
    weight = 0.1 * jax.random.normal(kw, (C_OUT, C_IN, K, K), dtype=jnp.float32)
    gamma = 1.0 + 0.1 * jax.random.normal(kg, (C_OUT,), dtype=jnp.float32)
    beta = 0.1 * jax.random.normal(kb, (C_OUT,), dtype=jnp.float32)

    ref = _reference_forward(x, weight, gamma, beta, stride=STRIDE)

    # --- f32 path (single masked P tile: P=49 < 128), tight tolerance. ---
    out = cnn_block_forward(x, weight, gamma, beta, stride=STRIDE, kernel_size=K,
                            compute_dtype=jnp.float32, out_dtype=jnp.float32)
    out = jax.block_until_ready(out)
    assert out.shape == ref.shape == (N, C_OUT, 7, 7), out.shape
    err = float(jnp.max(jnp.abs(out - ref)))
    assert err < 1e-3, err

    # --- bf16 patches/weights + bf16 output (BW-optimized path), loose tol. ---
    out_bf = cnn_block_forward(x, weight, gamma, beta, stride=STRIDE, kernel_size=K,
                               compute_dtype=jnp.bfloat16, out_dtype=jnp.bfloat16)
    out_bf = jax.block_until_ready(out_bf)
    err_bf = float(jnp.max(jnp.abs(out_bf.astype(jnp.float32) - ref)))
    assert err_bf < 1e-1, err_bf

    # --- Larger spatial: P = 31*31 = 961 -> two 512-wide tiles, last masked. ---
    H2 = W2 = 64
    x2 = jax.random.normal(kx2, (N, C_IN, H2, W2), dtype=jnp.float32)
    ref2 = _reference_forward(x2, weight, gamma, beta, stride=STRIDE)
    out2 = cnn_block_forward(x2, weight, gamma, beta, stride=STRIDE, kernel_size=K,
                             compute_dtype=jnp.float32, out_dtype=jnp.float32,
                             p_tile_max=512)
    out2 = jax.block_until_ready(out2)
    assert out2.shape == ref2.shape == (N, C_OUT, 31, 31), out2.shape
    err2 = float(jnp.max(jnp.abs(out2 - ref2)))
    assert err2 < 1e-3, err2

    print("KERNEL_OK")
</pallas_src>

<mosaic_0001>
module attributes {stable_mosaic.version = 11 : i64} {
  func.func @kernel(%arg0: i32, %arg1: i32, %arg2: memref<1x64x128xf32, #tpu.memory_space<vmem>>, %arg3: memref<8x64xf32, #tpu.memory_space<vmem>>, %arg4: memref<8x1xf32, #tpu.memory_space<vmem>>, %arg5: memref<8x1xf32, #tpu.memory_space<vmem>>, %arg6: memref<1x8x128xf32, #tpu.memory_space<vmem>>, %arg7: memref<8x1xf32, #tpu.memory_space<vmem>>, %arg8: memref<8x1xf32, #tpu.memory_space<vmem>>) attributes {dimension_semantics = [#tpu.dimension_semantics<parallel>, #tpu.dimension_semantics<arbitrary>], iteration_bounds = array<i64: 2, 1>, scalar_prefetch = 0 : i64, scratch_operands = 2 : i64, tpu.core_type = #tpu.core_type<tc>, window_params = [{transform_indices = @transform_0, window_bounds = array<i64: 1, 64, 128>}, {pipeline_mode = #tpu.pipeline_mode<synchronous>, transform_indices = @transform_1, window_bounds = array<i64: 8, 64>}, {pipeline_mode = #tpu.pipeline_mode<synchronous>, transform_indices = @transform_2, window_bounds = array<i64: 8, 1>}, {pipeline_mode = #tpu.pipeline_mode<synchronous>, transform_indices = @transform_3, window_bounds = array<i64: 8, 1>}, {transform_indices = @transform_4, window_bounds = array<i64: 1, 8, 128>}]} {
    %c0_i32 = arith.constant 0 : i32
    %0 = arith.cmpi eq, %arg1, %c0_i32 : i32
    %1 = arith.extui %0 : i1 to i32
    %c0_i32_0 = arith.constant 0 : i32
    %2 = arith.cmpi ne, %1, %c0_i32_0 : i32
    scf.if %2 {
      %cst_21 = arith.constant 0.000000e+00 : f32
      %32 = vector.broadcast %cst_21 : f32 to vector<8x1xf32>
      %c0_22 = arith.constant 0 : index
      %c0_23 = arith.constant 0 : index
      %33 = vector.load %arg7[%c0_22, %c0_23] : memref<8x1xf32, #tpu.memory_space<vmem>>, vector<8x1xf32>
      tpu.vector_store %arg7[%c0_22, %c0_23], %32 {strides = array<i32>} : memref<8x1xf32, #tpu.memory_space<vmem>>, vector<8x1xf32>,
      %cst_24 = arith.constant 0.000000e+00 : f32
      %34 = vector.broadcast %cst_24 : f32 to vector<8x1xf32>
      %c0_25 = arith.constant 0 : index
      %c0_26 = arith.constant 0 : index
      %35 = vector.load %arg8[%c0_25, %c0_26] : memref<8x1xf32, #tpu.memory_space<vmem>>, vector<8x1xf32>
      tpu.vector_store %arg8[%c0_25, %c0_26], %34 {strides = array<i32>} : memref<8x1xf32, #tpu.memory_space<vmem>>, vector<8x1xf32>,
    } else {
    }
    %c0 = arith.constant 0 : index
    %c0_1 = arith.constant 0 : index
    %3 = vector.load %arg3[%c0, %c0_1] : memref<8x64xf32, #tpu.memory_space<vmem>>, vector<8x64xf32>
    %c0_2 = arith.constant 0 : index
    %c0_3 = arith.constant 0 : index
    %c0_4 = arith.constant 0 : index
    %4 = vector.load %arg2[%c0_2, %c0_3, %c0_4] : memref<1x64x128xf32, #tpu.memory_space<vmem>>, vector<1x64x128xf32>
    %5 = vector.shape_cast %4 : vector<1x64x128xf32> to vector<64x128xf32>
    %cst = arith.constant dense<0.000000e+00> : vector<8x128xf32>
    %6 = tpu.matmul %3, %5, %cst {dimension_numbers = #tpu.dot_dimension_numbers<[1], [0], [0], [1], [0, 0, 1, 1], [], []>} : vector<8x64xf32>, vector<64x128xf32>, vector<8x128xf32> -> vector<8x128xf32>
    %7 = tpu.iota {dimensions = array<i32: 1>} : vector<8x128xi32>
    %c128_i32 = arith.constant 128 : i32
    %8 = arith.muli %arg1, %c128_i32 : i32
    %9 = vector.broadcast %8 : i32 to vector<8x128xi32>
    %10 = arith.addi %9, %7 : vector<8x128xi32>
    %c49_i32 = arith.constant 49 : i32
    %11 = vector.broadcast %c49_i32 : i32 to vector<8x128xi32>
    %12 = arith.cmpi slt, %10, %11 : vector<8x128xi32>
    %cst_5 = arith.constant 0.000000e+00 : f32
    %13 = vector.broadcast %cst_5 : f32 to vector<8x128xf32>
    %14 = arith.select %12, %6, %13 : vector<8x128xi1>, vector<8x128xf32>
    %c0_6 = arith.constant 0 : index
    %c0_7 = arith.constant 0 : index
    %15 = vector.load %arg7[%c0_6, %c0_7] : memref<8x1xf32, #tpu.memory_space<vmem>>, vector<8x1xf32>
    %cst_8 = arith.constant dense<0.000000e+00> : vector<8xf32>
    %16 = vector.multi_reduction <add>, %14, %cst_8 [1] : vector<8x128xf32> to vector<8xf32>
    %17 = vector.shape_cast %16 : vector<8xf32> to vector<8x1xf32>
    %18 = arith.addf %15, %17 : vector<8x1xf32>
    %c0_9 = arith.constant 0 : index
    %c0_10 = arith.constant 0 : index
    %19 = vector.load %arg7[%c0_9, %c0_10] : memref<8x1xf32, #tpu.memory_space<vmem>>, vector<8x1xf32>
    tpu.vector_store %arg7[%c0_9, %c0_10], %18 {strides = array<i32>} : memref<8x1xf32, #tpu.memory_space<vmem>>, vector<8x1xf32>,
    %c0_11 = arith.constant 0 : index
    %c0_12 = arith.constant 0 : index
    %20 = vector.load %arg8[%c0_11, %c0_12] : memref<8x1xf32, #tpu.memory_space<vmem>>, vector<8x1xf32>
    %21 = arith.mulf %14, %14 : vector<8x128xf32>
    %cst_13 = arith.constant dense<0.000000e+00> : vector<8xf32>
    %22 = vector.multi_reduction <add>, %21, %cst_13 [1] : vector<8x128xf32> to vector<8xf32>
    %23 = vector.shape_cast %22 : vector<8xf32> to vector<8x1xf32>
    %24 = arith.addf %20, %23 : vector<8x1xf32>
    %c0_14 = arith.constant 0 : index
    %c0_15 = arith.constant 0 : index
    %25 = vector.load %arg8[%c0_14, %c0_15] : memref<8x1xf32, #tpu.memory_space<vmem>>, vector<8x1xf32>
    tpu.vector_store %arg8[%c0_14, %c0_15], %24 {strides = array<i32>} : memref<8x1xf32, #tpu.memory_space<vmem>>, vector<8x1xf32>,
    %c0_16 = arith.constant 0 : index
    %c0_17 = arith.constant 0 : index
    %c0_18 = arith.constant 0 : index
    %26 = vector.load %arg6[%c0_16, %c0_17, %c0_18] : memref<1x8x128xf32, #tpu.memory_space<vmem>>, vector<1x8x128xf32>
    %27 = vector.shape_cast %26 : vector<1x8x128xf32> to vector<8x128xf32>
    %28 = vector.shape_cast %14 : vector<8x128xf32> to vector<1x8x128xf32>
    tpu.vector_store %arg6[%c0_16, %c0_17, %c0_18], %28 {strides = array<i32>} : memref<1x8x128xf32, #tpu.memory_space<vmem>>, vector<1x8x128xf32>,
    %c0_i32_19 = arith.constant 0 : i32
    %29 = arith.cmpi eq, %arg1, %c0_i32_19 : i32
    %30 = arith.extui %29 : i1 to i32
    %c0_i32_20 = arith.constant 0 : i32
    %31 = arith.cmpi ne, %30, %c0_i32_20 : i32
    scf.if %31 {
      %c0_21 = arith.constant 0 : index
      %c0_22 = arith.constant 0 : index
      %32 = vector.load %arg7[%c0_21, %c0_22] : memref<8x1xf32, #tpu.memory_space<vmem>>, vector<8x1xf32>
      %cst_23 = arith.constant 0.0204081628 : f32
      %33 = vector.broadcast %cst_23 : f32 to vector<8x1xf32>
      %34 = arith.mulf %32, %33 : vector<8x1xf32>
      %c0_24 = arith.constant 0 : index
      %c0_25 = arith.constant 0 : index
      %35 = vector.load %arg8[%c0_24, %c0_25] : memref<8x1xf32, #tpu.memory_space<vmem>>, vector<8x1xf32>
      %cst_26 = arith.constant 0.0204081628 : f32
      %36 = vector.broadcast %cst_26 : f32 to vector<8x1xf32>
      %37 = arith.mulf %35, %36 : vector<8x1xf32>
      %38 = arith.mulf %34, %34 : vector<8x1xf32>
      %39 = arith.subf %37, %38 : vector<8x1xf32>
      %cst_27 = arith.constant 0.000000e+00 : f32
      %40 = vector.broadcast %cst_27 : f32 to vector<8x1xf32>
      %41 = arith.maximumf %39, %40 : vector<8x1xf32>
      %c0_28 = arith.constant 0 : index
      %c0_29 = arith.constant 0 : index
      %42 = vector.load %arg4[%c0_28, %c0_29] : memref<8x1xf32, #tpu.memory_space<vmem>>, vector<8x1xf32>
      %cst_30 = arith.constant 9.99999974E-6 : f32
      %43 = vector.broadcast %cst_30 : f32 to vector<8x1xf32>
      %44 = arith.addf %41, %43 : vector<8x1xf32>
      %45 = math.rsqrt %44 : vector<8x1xf32>
      %46 = arith.mulf %42, %45 : vector<8x1xf32>
      %c0_31 = arith.constant 0 : index
      %c0_32 = arith.constant 0 : index
      %47 = vector.load %arg5[%c0_31, %c0_32] : memref<8x1xf32, #tpu.memory_space<vmem>>, vector<8x1xf32>
      %48 = arith.mulf %34, %46 : vector<8x1xf32>
      %49 = arith.subf %47, %48 : vector<8x1xf32>
      %c0_33 = arith.constant 0 : index
      %c0_34 = arith.constant 0 : index
      %c0_35 = arith.constant 0 : index
      %50 = vector.load %arg6[%c0_33, %c0_34, %c0_35] : memref<1x8x128xf32, #tpu.memory_space<vmem>>, vector<1x8x128xf32>
      %51 = vector.shape_cast %50 : vector<1x8x128xf32> to vector<8x128xf32>
      %52 = vector.broadcast %46 : vector<8x1xf32> to vector<8x128xf32>
      %53 = arith.mulf %51, %52 : vector<8x128xf32>
      %54 = vector.broadcast %49 : vector<8x1xf32> to vector<8x128xf32>
      %55 = arith.addf %53, %54 : vector<8x128xf32>
      %cst_36 = arith.constant 0.000000e+00 : f32
      %56 = vector.broadcast %cst_36 : f32 to vector<8x128xf32>
      %57 = arith.cmpf oge, %55, %56 : vector<8x128xf32>
      %cst_37 = arith.constant 2.000000e-01 : f32
      %58 = vector.broadcast %cst_37 : f32 to vector<8x128xf32>
      %59 = arith.mulf %58, %55 : vector<8x128xf32>
      %60 = arith.select %57, %55, %59 : vector<8x128xi1>, vector<8x128xf32>
      %c0_38 = arith.constant 0 : index
      %c0_39 = arith.constant 0 : index
      %c0_40 = arith.constant 0 : index
      %61 = vector.load %arg6[%c0_38, %c0_39, %c0_40] : memref<1x8x128xf32, #tpu.memory_space<vmem>>, vector<1x8x128xf32>
      %62 = vector.shape_cast %61 : vector<1x8x128xf32> to vector<8x128xf32>
      %63 = vector.shape_cast %60 : vector<8x128xf32> to vector<1x8x128xf32>
      tpu.vector_store %arg6[%c0_38, %c0_39, %c0_40], %63 {strides = array<i32>} : memref<1x8x128xf32, #tpu.memory_space<vmem>>, vector<1x8x128xf32>,
    } else {
    }
    return
  }
  func.func @transform_0(%arg0: i32, %arg1: i32) -> (i32, i32, i32) {
    %c0_i32 = arith.constant 0 : i32
    %c0_i32_0 = arith.constant 0 : i32
    return %arg0, %c0_i32, %arg1 : i32, i32, i32
  }
  func.func @transform_1(%arg0: i32, %arg1: i32) -> (i32, i32) {
    %c0_i32 = arith.constant 0 : i32
    %c0_i32_0 = arith.constant 0 : i32
    %c0_i32_1 = arith.constant 0 : i32
    return %c0_i32, %c0_i32_0 : i32, i32
  }
  func.func @transform_2(%arg0: i32, %arg1: i32) -> (i32, i32) {
    %c0_i32 = arith.constant 0 : i32
    %c0_i32_0 = arith.constant 0 : i32
    %c0_i32_1 = arith.constant 0 : i32
    return %c0_i32, %c0_i32_0 : i32, i32
  }
  func.func @transform_3(%arg0: i32, %arg1: i32) -> (i32, i32) {
    %c0_i32 = arith.constant 0 : i32
    %c0_i32_0 = arith.constant 0 : i32
    %c0_i32_1 = arith.constant 0 : i32
    return %c0_i32, %c0_i32_0 : i32, i32
  }
  func.func @transform_4(%arg0: i32, %arg1: i32) -> (i32, i32, i32) {
    %c0_i32 = arith.constant 0 : i32
    %c0_i32_0 = arith.constant 0 : i32
    %c0_i32_1 = arith.constant 0 : i32
    return %arg0, %c0_i32, %c0_i32_0 : i32, i32, i32
  }
}

</mosaic_0001>

<bundles_post_ra>
// kernel: cnn_block_forward.1
= control target key start
LH: loop header
LB: loop body
LE: loop exit
PB: predicated region body
PF: predicated region fallthrough
CT: control target
= control target key end

     0   :  { %s567_s15 = smov 0   ;;  %s569_s16 = smov 0   ;;  %s617_s0 = inlined_call_operand.vmem [shape: f32[2,64,49], index: 0, kind: input, shape index: {}]   ;;  %s618_s1 = inlined_call_operand.vmem [shape: f32[8,64], index: 1, kind: input, shape index: {}]   ;;  %s619_s2 = inlined_call_operand.vmem [shape: f32[8,1], index: 2, kind: input, shape index: {}]   ;;  %s620_s3 = inlined_call_operand.vmem [shape: f32[8,1], index: 3, kind: input, shape index: {}]   ;;  %s621_s4 = inlined_call_operand.vmem [shape: f32[2,8,49], index: 4, kind: output, shape index: {}]  }
   0x1   :  { %s571_s17 = smov 0  }
   0x2 LB: > { %s26_s18 = sadd.s32 1, %s532_s16  ;;  %p434_p0 = scmp.ge.s32.totalorder %s536_s17, 1  ;;  %s536_s17 = sphi %s571_s17, %s14_s17   ;;  %s532_s16 = sphi %s569_s16, %s623_s16   ;;  %s528_s15 = sphi %s567_s15, %s622_s15  }
   0x3   : > { %p28_p1 = scmp.ge.s32.totalorder %s26_s18, 2  ;;  %p179_p2 = scmp.lt.s32.totalorder %s536_s17, 3 }
   0x5   : > { %s625_s18 = smov (%p28_p1, %s26_s18), 0  ;;  %p180_p3 = pnand %p434_p0, %p179_p2 }
   0x6   : > { %p207_p4 = scmp.lt.s32.totalorder (!%p180_p3), %s528_s15, 1  ;;  %vm223_vm0 = vcmask (!%p180_p3), 7168   ;;  %v538_v0 = vmov (!%p180_p3), 0.0|0.0   ;;  %v539_v1 = vmov (!%p180_p3), 0.0   ;;  %vm540_vm1 = vmmov (!%p180_p3), 0   ;;  %v226_v14 = vld [vmem:[%s618_s1] sm:$0xff] (!%p180_p3) }
   0x7   : > { %183 = sbr.rel (%p180_p3) target bundleno = 563 (0x233), region = 36  ;;  %470 = vmatprep.subr.bf16.mxu0 (!%p180_p3), %v538_v0  ;;  %224 = vst.msk [vmem:[#allocation2] sm:$0xff] (!%p180_p3), %vm223_vm0, %v539_v1  ;;  %225 = vst.msk [vmem:[#allocation3] sm:$0xff] (!%p180_p3), %vm223_vm0, %v539_v1  ;;  %467 = vmatprep.mubr.msk.f32.mxu0 (!%p180_p3), %vm540_vm1, %v539_v1  ;;  %vm235_vm2 = vcmask (!%p180_p3), 523264   ;;  %v309_v15 = vlaneseq (!%p180_p3)  ;;  %v541_v21 = vmov (!%p180_p3), 0   ;;  %v339_v36 = vld [vmem:[%s619_s2] sm:$0xff] (!%p180_p3) }
   0x8   : > { %510 = vset.pattern.permute.xlu1 (!%p180_p3), %v541_v21  ;;  %511 = vset.pattern.permute.xlu0 (!%p180_p3), %v541_v21  ;;  %v343_v39 = vld [vmem:[%s620_s3] sm:$0xff] (!%p180_p3) }
   0x9   : > { %v310_v16 = vand.u32 (!%p180_p3), 127, %v309_v15 }
   0xb   : > { %vm314_vm3 = vcmp.lt.s32.totalorder (!%p180_p3), %v310_v16, 49 }
   0xe   : > { %s627_s15 = smov (!%p207_p4, %s528_s15), 1  ;;  %v316_v22 = vld [vmem:[#allocation2] sm:$0xff]  ;;  %v322_v25 = vld [vmem:[#allocation3] sm:$0xff] }
   0xf   : > { %s441_s19 = sshll.u32 %s627_s15, 6  ;;  %s437_s29 = sshll.u32 %s627_s15, 3 }
  0x10   : > { %s214_s22 = scalar_lea.vmem %s617_s0, %s441_s19  ;;  %s218_s6 = scalar_lea.vmem %s621_s4, %s437_s29 }
  0x11   : > { %v227_v2 = vld [vmem:[%s214_s22] sm:$0xff]  ;;  %v228_v3 = vld [vmem:[%s214_s22 + $0x8] sm:$0xff]  ;;  %v229_v4 = vld [vmem:[%s214_s22 + $0x10] sm:$0xff] }
  0x12   : > { %v471_v5 = vpack.c.bf16 %v228_v3, %v227_v2  ;;  %v230_v6 = vld [vmem:[%s214_s22 + $0x18] sm:$0xff]  ;;  %v231_v8 = vld [vmem:[%s214_s22 + $0x20] sm:$0xff]  ;;  %v232_v9 = vld [vmem:[%s214_s22 + $0x28] sm:$0xff] }
  0x13   : > { %v474_v7 = vpack.c.bf16 %v230_v6, %v229_v4  ;;  %v477_v10 = vpack.c.bf16 %v232_v9, %v231_v8  ;;  %v233_v11 = vld [vmem:[%s214_s22 + $0x30] sm:$0xff]  ;;  %v234_v12 = vld [vmem:[%s214_s22 + $0x38] sm:$0xff] }
  0x14   : > { %472 = vmatpush3.bf16.msra.mxu0 %v471_v5  ;;  %v480_v13 = vpack.c.bf16 %v234_v12, %v233_v11 }
  0x15   : > { %473 = vmatprep.subr.bf16.mxu0 %v538_v0 }
  0x18   : > { %475 = vmatpush3.bf16.msra.mxu0 %v474_v7 }
  0x19   : > { %476 = vmatprep.subr.bf16.mxu0 %v538_v0 }
  0x1c   : > { %478 = vmatpush3.bf16.msra.mxu0 %v477_v10 }
  0x1d   : > { %479 = vmatprep.subr.bf16.mxu0 %v538_v0 }
  0x20   : > { %481 = vmatpush3.bf16.msra.mxu0 %v480_v13 }
  0x23   : > { %468 = vmatmul.mubr.msk.f32.vlgmr.msra.gmra.mrb[0].mxu0 %vm235_vm2, %v226_v14 }
  0xf6   : > { %v305_v17 = vpop.f32.mrb[0].mxu0 }
  0xf7   : > { %v315_v18 = vsel %vm314_vm3, %v305_v17, 0.0  ;;  %v469_v19 = vpop.f32.mrb[1].mxu0 }
  0xf8   : > { %317 = vadd.xlane.f32.xlu0 %v315_v18  ;;  %v323_v20 = vmul.f32 %v315_v18, %v315_v18 }
  0xfc   : > { %324 = vadd.xlane.f32.xlu0 %v323_v20 }
 0x185   : > { %v318_v23 = vpop.xlane.xlu0 %317 }
 0x186   : > { %v319_v24 = vadd.f32 %v318_v23, %v316_v22 }
 0x188   : > { %321 = vst.msk [vmem:[#allocation2] sm:$0xff] %vm223_vm0, %v319_v24 }
 0x189   : > { %v325_v26 = vpop.xlane.xlu0 %324 }
 0x18a   : > { %v326_v27 = vadd.f32 %v325_v26, %v322_v25 }
 0x18c   : > { %327 = vst.msk [vmem:[#allocation3] sm:$0xff] %vm223_vm0, %v326_v27 }
 0x18f   : > { %v332_v28 = vld [vmem:[#allocation2] sm:$0xff] }
 0x190   : > { %v333_v29 = vmul.f32 0.020408163, %v332_v28 }
 0x192   : > { %v336_v32 = vmul.f32 %v333_v29, %v333_v29 }
 0x193   : > { %v334_v30 = vld [vmem:[#allocation3] sm:$0xff] }
 0x194   : > { %v335_v31 = vmul.f32 0.020408163, %v334_v30 }
 0x196   : > { %v337_v33 = vsub.f32 %v335_v31, %v336_v32 }
 0x198   : > { %v338_v34 = vmax.f32 %v337_v33, 0.0 }
 0x19a   : > { %v340_v35 = vadd.f32 1e-05, %v338_v34 }
 0x19c   : > { %512 = vrsqrt.f32 %v340_v35 }
 0x1a6   : > { %v513_v37 = vpop.eup %512 }
 0x1a7   : > { %v342_v38 = vmul.f32 %v513_v37, %v339_v36 }
 0x1a9   : > { %349 = vperm.xlu1 %510, %v342_v38   ;;  %v344_v40 = vmul.f32 %v342_v38, %v333_v29 }
 0x1ab   : > { %v345_v41 = vsub.f32 %v343_v39, %v344_v40 }
 0x1ad   : > { %355 = vperm.xlu1 %510, %v345_v41  }
 0x228   : > { %v350_v42 = vpop.permute.xlu1 %349 }
 0x229   : > { %v352_v43 = vmul.f32 %v350_v42, %v315_v18 }
 0x22c   : > { %v356_v44 = vpop.permute.xlu1 %355 }
 0x22d   : > { %v358_v45 = vadd.f32 %v356_v44, %v352_v43 }
 0x22f   : > { %vm359_vm4 = vcmp.ge.f32.partialorder %v358_v45, 0.0  ;;  %v360_v46 = vmul.f32 0.2, %v358_v45 }
 0x231   : > { %v361_v47 = vsel %vm359_vm4, %v358_v45, %v360_v46 }
 0x232   : > { %362 = vst [vmem:[%s218_s6] sm:$0xff] %v361_v47 }
 0x233 PF: > { %s14_s17 = sadd.s32 1, %s536_s17   ;;  %s622_s15 = smov %s532_s16 }
 0x234   : > { %p11_p5 = scmp.ge.s32.totalorder %s14_s17, 4   ;;  %s623_s16 = smov %s625_s18 }
 0x236   :  { %13 = sbr.rel (!%p11_p5) target bundleno = 2 (0x2), region = 74 }

</bundles_post_ra>
